<compile_context>
chip_gen: v5e
topology: v5e:2x2
jax: 0.10.0
libtpu: 0.0.40
codegen_flags: <defaults>
</compile_context>

<pallas_src>
import numpy as np
import jax
import jax.numpy as jnp
from jax.experimental import pallas as pl
from jax.experimental.pallas import tpu as pltpu


# ---------------------------------------------------------------------------
# Path 1: module layout, no transposes (VPU multiply-accumulate kernel).
# ---------------------------------------------------------------------------
def _rotmap_lane_kernel(w_ref, x_ref, o_ref):
    """out[b, i, t] = sum_m w[m, i, t] * x[b, m, t].

    w_ref: (D, D, T)  lane-expanded weights, laid out [m, i, t]
    x_ref: (NB, D, T) input slab,  laid out [b, m, t]
    o_ref: (NB, D, T) output slab, laid out [b, i, t]
    """
    d = w_ref.shape[0]
    x = x_ref[...].astype(jnp.float32)                       # (NB, D, T)
    acc = x[:, 0:1, :] * w_ref[0][None].astype(jnp.float32)  # (NB, D, T)
    for m in range(1, d):                                     # D is tiny (3 or 8)
        acc = acc + x[:, m:m + 1, :] * w_ref[m][None].astype(jnp.float32)
    o_ref[...] = acc.astype(o_ref.dtype)


def rotmap_forward(x, w, *, block_n=None, vmem_budget_bytes=8 << 20):
    """x: [N, D, D, num, frame]; w: [D, D, num]. Returns [N, D, D, num, frame]."""
    N, D, D2, num, frame = x.shape
    assert D == D2 and w.shape == (D, D, num)
    L = D * num * frame                      # lane index l = (j, k, f)
    dtype = x.dtype
    itemsize = jnp.dtype(dtype).itemsize

    # Pure reshape (no transpose, no HBM copy): [N, D_m, D_j, num, frame] -> [N, D_m, L].
    x2 = x.reshape(N, D, L)

    # Lane-expanded weights: W2[m, i, l] = w[i, m, k(l)], k(l) = (l // frame) % num.
    # Built once; D^2*L elements ~ (D/N) of x's footprint.
    w2 = jnp.broadcast_to(
        jnp.transpose(w.astype(dtype), (1, 0, 2))[:, :, None, :, None],
        (D, D, D, num, frame),
    ).reshape(D, D, L)

    nb = min(N, block_n if block_n is not None else 8)

    # Lane tile chosen from a total double-buffered VMEM budget (x + out + w blocks).
    per_lane = (2 * nb * D + D * D) * itemsize * 2
    t_budget = max(128, int(vmem_budget_bytes) // per_lane)
    lane_tile = L if L <= t_budget else max(128, (t_budget // 128) * 128)
    # TODO(synk): for tiny problems (L < 128) the output lane width is < 128 and
    # stores are masked; batching more calls together would avoid that.

    # Lane axis outer, batch axis inner: the weight block index only depends on
    # the outer axis, so it is not re-DMA'd across the inner batch loop.
    grid = (pl.cdiv(L, lane_tile), pl.cdiv(N, nb))

    out2 = pl.pallas_call(
        _rotmap_lane_kernel,
        out_shape=jax.ShapeDtypeStruct((N, D, L), dtype),
        grid_spec=pltpu.PrefetchScalarGridSpec(
            num_scalar_prefetch=0,
            grid=grid,
            in_specs=[
                pl.BlockSpec((D, D, lane_tile), lambda lb, bb: (0, 0, lb)),
                pl.BlockSpec((nb, D, lane_tile), lambda lb, bb: (bb, 0, lb)),
            ],
            out_specs=pl.BlockSpec((nb, D, lane_tile), lambda lb, bb: (bb, 0, lb)),
        ),
        compiler_params=pltpu.CompilerParams(
            dimension_semantics=("parallel", "parallel"),
            vmem_limit_bytes=32 * 1024 * 1024,
        ),
    )(w2, x2)

    # Pure reshape back to the module's output layout.
    return out2.reshape(N, D, D, num, frame)


# ---------------------------------------------------------------------------
# Path 2: kernel-native layout, block-diagonal MXU matmul (optional bf16).
# ---------------------------------------------------------------------------
def _rotmap_native_kernel(w_ref, x_ref, o_ref):
    # w_ref: (num*D, num*D) block-diagonal weights, resident in VMEM
    # x_ref / o_ref: (num*D, lane_tile) lane-dense slabs
    o_ref[...] = jnp.dot(w_ref[...], x_ref[...],
                         preferred_element_type=jnp.float32).astype(o_ref.dtype)


def rotmap_forward_native(x_k, w_k, *, lane_tile_bytes=2 << 20, transfer_dtype=None):
    """Kernel-native entry: x_k (num, D, L), w_k (num, D, D) -> out[k] = w_k[k] @ x_k[k]."""
    num, D, L = x_k.shape
    assert w_k.shape == (num, D, D)
    if transfer_dtype is not None:            # e.g. jnp.bfloat16 halves HBM bytes;
        x_k = x_k.astype(transfer_dtype)      # accumulation stays f32 in the kernel.
        w_k = w_k.astype(transfer_dtype)
    dtype = x_k.dtype
    itemsize = jnp.dtype(dtype).itemsize
    KD = num * D
    if KD * KD * itemsize > (4 << 20):
        # TODO(synk): fall back to a per-k grid axis when num*D is too large for
        # the block-diagonal weight to stay resident in VMEM.
        raise ValueError("num*D too large for the block-diagonal packed kernel")

    # Block-diagonal packing: one matmul covers every rotation index, raising the
    # MXU contraction dim from D to num*D and removing the `num` grid axis.
    w_bd = (jnp.eye(num, dtype=dtype)[:, None, :, None]
            * w_k[:, :, None, :].astype(dtype)).reshape(KD, KD)
    x_flat = x_k.reshape(KD, L)               # pure reshape, no copy

    max_tile = max(128, (lane_tile_bytes // (KD * itemsize)) // 128 * 128)
    lane_tile = L if L <= max_tile else max_tile
    grid = (pl.cdiv(L, lane_tile),)           # ragged tail handled by masking (no jnp.pad)

    out_flat = pl.pallas_call(
        _rotmap_native_kernel,
        out_shape=jax.ShapeDtypeStruct((KD, L), dtype),
        grid_spec=pltpu.PrefetchScalarGridSpec(
            num_scalar_prefetch=0,
            grid=grid,
            in_specs=[
                pl.BlockSpec((KD, KD), lambda b: (0, 0)),        # resident weights
                pl.BlockSpec((KD, lane_tile), lambda b: (0, b)),
            ],
            out_specs=pl.BlockSpec((KD, lane_tile), lambda b: (0, b)),
        ),
        compiler_params=pltpu.CompilerParams(
            dimension_semantics=("parallel",),
            vmem_limit_bytes=32 * 1024 * 1024,
        ),
    )(w_bd, x_flat)

    return out_flat.reshape(num, D, L)


# ---------------------------------------------------------------------------
# Helpers: deterministic weight init (module's __init__) and a JAX reference.
# ---------------------------------------------------------------------------
def make_rotmap_weights(D_in, num):
    """Deterministic re-creation of RotMap.__init__: orthogonal D x D slices."""
    np.random.seed(1234)
    w = np.zeros((D_in, D_in, num), dtype=np.float32)
    for i in range(num):
        a = np.random.randn(D_in, D_in).astype(np.float32)
        u, _, _ = np.linalg.svd(a)
        w[:, :, i] = u
    return jnp.asarray(w)


def _reference(x, w):
    # Pure-JAX reference of the PyTorch forward.
    return jnp.einsum("imk,nmjkf->nijkf", w, x)


if __name__ == "__main__":
    key = jax.random.PRNGKey(0)
    k1, k2, k3 = jax.random.split(key, 3)

    # --- Test 1: module-layout path, D=8 (single full-extent lane tile). ---
    N, D, num, frame = 2, 8, 4, 3
    w = make_rotmap_weights(D, num)
    x = jax.random.normal(k1, (N, D, D, num, frame), dtype=jnp.float32)
    out = jax.block_until_ready(rotmap_forward(x, w))
    assert out.shape == (N, D, D, num, frame)
    np.testing.assert_allclose(np.asarray(out), np.asarray(_reference(x, w)),
                               rtol=1e-4, atol=1e-4)

    # --- Test 2: module-layout path, LieNet-typical D=3, forced lane + batch
    #     tiling (exercises ragged masked tails; no jnp.pad copies). ---
    N2, D2, num2, frame2 = 4, 3, 6, 10          # L = 3*6*10 = 180 -> 128-lane tiles
    w2 = make_rotmap_weights(D2, num2)
    x2 = jax.random.normal(k2, (N2, D2, D2, num2, frame2), dtype=jnp.float32)
    out2 = jax.block_until_ready(
        rotmap_forward(x2, w2, block_n=3, vmem_budget_bytes=32 * 1024))
    np.testing.assert_allclose(np.asarray(out2), np.asarray(_reference(x2, w2)),
                               rtol=1e-4, atol=1e-4)

    # --- Test 3: kernel-native MXU path (block-diagonal weights), f32, forced
    #     lane tiling with a ragged tail. ---
    num3, D3, L3 = 4, 8, 300
    w3 = make_rotmap_weights(D3, num3)
    w_k = jnp.transpose(w3, (2, 0, 1))          # (num, D, D)
    x_k = jax.random.normal(k3, (num3, D3, L3), dtype=jnp.float32)
    ref_k = jnp.einsum("kim,kml->kil", w_k, x_k)
    out_k = jax.block_until_ready(
        rotmap_forward_native(x_k, w_k, lane_tile_bytes=num3 * D3 * 4 * 128))
    np.testing.assert_allclose(np.asarray(out_k), np.asarray(ref_k),
                               rtol=1e-4, atol=1e-4)

    # --- Test 4: native path with bfloat16 transfer (f32 accumulation). ---
    out_k16 = jax.block_until_ready(
        rotmap_forward_native(x_k, w_k, transfer_dtype=jnp.bfloat16))
    np.testing.assert_allclose(np.asarray(out_k16.astype(jnp.float32)),
                               np.asarray(ref_k), rtol=5e-2, atol=1e-1)

    print("KERNEL_OK")
</pallas_src>

<mosaic_0001>
module attributes {stable_mosaic.version = 11 : i64} {
  func.func @_rotmap_lane_kernel(%arg0: i32, %arg1: i32, %arg2: memref<8x8x96xf32, #tpu.memory_space<vmem>>, %arg3: memref<2x8x96xf32, #tpu.memory_space<vmem>>, %arg4: memref<2x8x96xf32, #tpu.memory_space<vmem>>) attributes {dimension_semantics = [#tpu.dimension_semantics<parallel>, #tpu.dimension_semantics<parallel>], iteration_bounds = array<i64: 1, 1>, scalar_prefetch = 0 : i64, scratch_operands = 0 : i64, tpu.core_type = #tpu.core_type<tc>, window_params = [{transform_indices = @transform_0, window_bounds = array<i64: 8, 8, 96>}, {transform_indices = @transform_1, window_bounds = array<i64: 2, 8, 96>}, {transform_indices = @transform_2, window_bounds = array<i64: 2, 8, 96>}]} {
    %c0 = arith.constant 0 : index
    %c0_0 = arith.constant 0 : index
    %c0_1 = arith.constant 0 : index
    %0 = vector.load %arg3[%c0, %c0_0, %c0_1] : memref<2x8x96xf32, #tpu.memory_space<vmem>>, vector<2x8x96xf32>
    %1 = vector.extract_strided_slice %0 {offsets = [0, 0, 0], sizes = [2, 1, 96], strides = [1, 1, 1]} : vector<2x8x96xf32> to vector<2x1x96xf32>
    %c0_2 = arith.constant 0 : index
    %c0_3 = arith.constant 0 : index
    %c0_4 = arith.constant 0 : index
    %2 = vector.load %arg2[%c0_2, %c0_3, %c0_4] : memref<8x8x96xf32, #tpu.memory_space<vmem>>, vector<1x8x96xf32>
    %3 = vector.shape_cast %2 : vector<1x8x96xf32> to vector<8x96xf32>
    %4 = vector.shape_cast %3 : vector<8x96xf32> to vector<1x8x96xf32>
    %5 = vector.broadcast %1 : vector<2x1x96xf32> to vector<2x8x96xf32>
    %6 = vector.broadcast %4 : vector<1x8x96xf32> to vector<2x8x96xf32>
    %7 = arith.mulf %5, %6 : vector<2x8x96xf32>
    %8 = vector.extract_strided_slice %0 {offsets = [0, 1, 0], sizes = [2, 1, 96], strides = [1, 1, 1]} : vector<2x8x96xf32> to vector<2x1x96xf32>
    %c1 = arith.constant 1 : index
    %c0_5 = arith.constant 0 : index
    %c0_6 = arith.constant 0 : index
    %9 = vector.load %arg2[%c1, %c0_5, %c0_6] : memref<8x8x96xf32, #tpu.memory_space<vmem>>, vector<1x8x96xf32>
    %10 = vector.shape_cast %9 : vector<1x8x96xf32> to vector<8x96xf32>
    %11 = vector.shape_cast %10 : vector<8x96xf32> to vector<1x8x96xf32>
    %12 = vector.broadcast %8 : vector<2x1x96xf32> to vector<2x8x96xf32>
    %13 = vector.broadcast %11 : vector<1x8x96xf32> to vector<2x8x96xf32>
    %14 = arith.mulf %12, %13 : vector<2x8x96xf32>
    %15 = arith.addf %7, %14 : vector<2x8x96xf32>
    %16 = vector.extract_strided_slice %0 {offsets = [0, 2, 0], sizes = [2, 1, 96], strides = [1, 1, 1]} : vector<2x8x96xf32> to vector<2x1x96xf32>
    %c2 = arith.constant 2 : index
    %c0_7 = arith.constant 0 : index
    %c0_8 = arith.constant 0 : index
    %17 = vector.load %arg2[%c2, %c0_7, %c0_8] : memref<8x8x96xf32, #tpu.memory_space<vmem>>, vector<1x8x96xf32>
    %18 = vector.shape_cast %17 : vector<1x8x96xf32> to vector<8x96xf32>
    %19 = vector.shape_cast %18 : vector<8x96xf32> to vector<1x8x96xf32>
    %20 = vector.broadcast %16 : vector<2x1x96xf32> to vector<2x8x96xf32>
    %21 = vector.broadcast %19 : vector<1x8x96xf32> to vector<2x8x96xf32>
    %22 = arith.mulf %20, %21 : vector<2x8x96xf32>
    %23 = arith.addf %15, %22 : vector<2x8x96xf32>
    %24 = vector.extract_strided_slice %0 {offsets = [0, 3, 0], sizes = [2, 1, 96], strides = [1, 1, 1]} : vector<2x8x96xf32> to vector<2x1x96xf32>
    %c3 = arith.constant 3 : index
    %c0_9 = arith.constant 0 : index
    %c0_10 = arith.constant 0 : index
    %25 = vector.load %arg2[%c3, %c0_9, %c0_10] : memref<8x8x96xf32, #tpu.memory_space<vmem>>, vector<1x8x96xf32>
    %26 = vector.shape_cast %25 : vector<1x8x96xf32> to vector<8x96xf32>
    %27 = vector.shape_cast %26 : vector<8x96xf32> to vector<1x8x96xf32>
    %28 = vector.broadcast %24 : vector<2x1x96xf32> to vector<2x8x96xf32>
    %29 = vector.broadcast %27 : vector<1x8x96xf32> to vector<2x8x96xf32>
    %30 = arith.mulf %28, %29 : vector<2x8x96xf32>
    %31 = arith.addf %23, %30 : vector<2x8x96xf32>
    %32 = vector.extract_strided_slice %0 {offsets = [0, 4, 0], sizes = [2, 1, 96], strides = [1, 1, 1]} : vector<2x8x96xf32> to vector<2x1x96xf32>
    %c4 = arith.constant 4 : index
    %c0_11 = arith.constant 0 : index
    %c0_12 = arith.constant 0 : index
    %33 = vector.load %arg2[%c4, %c0_11, %c0_12] : memref<8x8x96xf32, #tpu.memory_space<vmem>>, vector<1x8x96xf32>
    %34 = vector.shape_cast %33 : vector<1x8x96xf32> to vector<8x96xf32>
    %35 = vector.shape_cast %34 : vector<8x96xf32> to vector<1x8x96xf32>
    %36 = vector.broadcast %32 : vector<2x1x96xf32> to vector<2x8x96xf32>
    %37 = vector.broadcast %35 : vector<1x8x96xf32> to vector<2x8x96xf32>
    %38 = arith.mulf %36, %37 : vector<2x8x96xf32>
    %39 = arith.addf %31, %38 : vector<2x8x96xf32>
    %40 = vector.extract_strided_slice %0 {offsets = [0, 5, 0], sizes = [2, 1, 96], strides = [1, 1, 1]} : vector<2x8x96xf32> to vector<2x1x96xf32>
    %c5 = arith.constant 5 : index
    %c0_13 = arith.constant 0 : index
    %c0_14 = arith.constant 0 : index
    %41 = vector.load %arg2[%c5, %c0_13, %c0_14] : memref<8x8x96xf32, #tpu.memory_space<vmem>>, vector<1x8x96xf32>
    %42 = vector.shape_cast %41 : vector<1x8x96xf32> to vector<8x96xf32>
    %43 = vector.shape_cast %42 : vector<8x96xf32> to vector<1x8x96xf32>
    %44 = vector.broadcast %40 : vector<2x1x96xf32> to vector<2x8x96xf32>
    %45 = vector.broadcast %43 : vector<1x8x96xf32> to vector<2x8x96xf32>
    %46 = arith.mulf %44, %45 : vector<2x8x96xf32>
    %47 = arith.addf %39, %46 : vector<2x8x96xf32>
    %48 = vector.extract_strided_slice %0 {offsets = [0, 6, 0], sizes = [2, 1, 96], strides = [1, 1, 1]} : vector<2x8x96xf32> to vector<2x1x96xf32>
    %c6 = arith.constant 6 : index
    %c0_15 = arith.constant 0 : index
    %c0_16 = arith.constant 0 : index
    %49 = vector.load %arg2[%c6, %c0_15, %c0_16] : memref<8x8x96xf32, #tpu.memory_space<vmem>>, vector<1x8x96xf32>
    %50 = vector.shape_cast %49 : vector<1x8x96xf32> to vector<8x96xf32>
    %51 = vector.shape_cast %50 : vector<8x96xf32> to vector<1x8x96xf32>
    %52 = vector.broadcast %48 : vector<2x1x96xf32> to vector<2x8x96xf32>
    %53 = vector.broadcast %51 : vector<1x8x96xf32> to vector<2x8x96xf32>
    %54 = arith.mulf %52, %53 : vector<2x8x96xf32>
    %55 = arith.addf %47, %54 : vector<2x8x96xf32>
    %56 = vector.extract_strided_slice %0 {offsets = [0, 7, 0], sizes = [2, 1, 96], strides = [1, 1, 1]} : vector<2x8x96xf32> to vector<2x1x96xf32>
    %c7 = arith.constant 7 : index
    %c0_17 = arith.constant 0 : index
    %c0_18 = arith.constant 0 : index
    %57 = vector.load %arg2[%c7, %c0_17, %c0_18] : memref<8x8x96xf32, #tpu.memory_space<vmem>>, vector<1x8x96xf32>
    %58 = vector.shape_cast %57 : vector<1x8x96xf32> to vector<8x96xf32>
    %59 = vector.shape_cast %58 : vector<8x96xf32> to vector<1x8x96xf32>
    %60 = vector.broadcast %56 : vector<2x1x96xf32> to vector<2x8x96xf32>
    %61 = vector.broadcast %59 : vector<1x8x96xf32> to vector<2x8x96xf32>
    %62 = arith.mulf %60, %61 : vector<2x8x96xf32>
    %63 = arith.addf %55, %62 : vector<2x8x96xf32>
    %c0_19 = arith.constant 0 : index
    %c0_20 = arith.constant 0 : index
    %c0_21 = arith.constant 0 : index
    %64 = vector.load %arg4[%c0_19, %c0_20, %c0_21] : memref<2x8x96xf32, #tpu.memory_space<vmem>>, vector<2x8x96xf32>
    tpu.vector_store %arg4[%c0_19, %c0_20, %c0_21], %63 {strides = array<i32>} : memref<2x8x96xf32, #tpu.memory_space<vmem>>, vector<2x8x96xf32>,
    return
  }
  func.func @transform_0(%arg0: i32, %arg1: i32) -> (i32, i32, i32) {
    %c0_i32 = arith.constant 0 : i32
    %c0_i32_0 = arith.constant 0 : i32
    %c0_i32_1 = arith.constant 0 : i32
    return %c0_i32, %c0_i32_0, %arg0 : i32, i32, i32
  }
  func.func @transform_1(%arg0: i32, %arg1: i32) -> (i32, i32, i32) {
    %c0_i32 = arith.constant 0 : i32
    %c0_i32_0 = arith.constant 0 : i32
    return %arg1, %c0_i32, %arg0 : i32, i32, i32
  }
  func.func @transform_2(%arg0: i32, %arg1: i32) -> (i32, i32, i32) {
    %c0_i32 = arith.constant 0 : i32
    %c0_i32_0 = arith.constant 0 : i32
    return %arg1, %c0_i32, %arg0 : i32, i32, i32
  }
}

</mosaic_0001>

<bundles_post_ra>
// kernel: tpu_custom_call.1
= control target key start
LH: loop header
LB: loop body
LE: loop exit
PB: predicated region body
PF: predicated region fallthrough
CT: control target
= control target key end

     0   :  { %7 = vsyncpa [#allocation3], 0  ;;  %s251_s0 = inlined_call_operand.hbm [shape: f32[8,8,96], index: 0, kind: input, shape index: {}]   ;;  %s252_s1 = inlined_call_operand.hbm [shape: f32[2,8,96], index: 1, kind: input, shape index: {}]   ;;  %s253_s2 = inlined_call_operand.hbm [shape: f32[2,8,96], index: 2, kind: output, shape index: {}]  }
   0x1   :  { %8 = vsyncpa [#allocation6], 0 }
   0x2   :  { %9 = vsyncpa [#allocation4], 0  ;;  %s14_s11 = sshll.u32 %s251_s0, 4  ;;  %s213_s12 = smov [#allocation2]   ;;  %s15_s11 = int_to_ptr.hbm [resolvable:$true] %s14_s11 }
   0x3   :  { %s16_s13 = sshll.u32 %s213_s12, 4  ;;  %s27_s16 = sshll.u32 %s252_s1, 4  ;;  %s17_s13 = int_to_ptr.vmem [resolvable:$true] %s16_s13  ;;  %s28_s16 = int_to_ptr.hbm [resolvable:$true] %s27_s16 }
   0x4   :  { %s214_s17 = smov 128   ;;  %s215_s18 = smov 8  }
   0x5   :  { %22 = dma.hbm_to_vmem [thread:$0]  %s15_s11, 1024, %s17_s13, [#allocation3], %s214_s17, %s214_s17, %s215_s18  }
   0x6   :  { %s216_s19 = smov [#allocation5]  }
   0x7   :  { %s29_s20 = sshll.u32 %s216_s19, 4  ;;  %s30_s20 = int_to_ptr.vmem [resolvable:$true] %s29_s20 }
   0x8   :  { %35 = dma.hbm_to_vmem [thread:$0]  %s28_s16, 256, %s30_s20, [#allocation6], %s214_s17, %s214_s17, %s215_s18  }
   0x9   :  { %207 = dma.done.wait [#allocation3], 1024  }
   0xa   :  { %208 = vsyncadd [#allocation3], 4294966272 }
   0xb   :  { %209 = dma.done.wait [#allocation6], 256  }
   0xc   :  { %210 = vsyncadd [#allocation6], 4294967040  ;;  %v44_v0 = vld [vmem:[#allocation5] sm:$0xff]  ;;  %v52_v2 = vld [vmem:[#allocation2 + $0x8] sm:$0xff]  ;;  %vm107_vm0 = vcmask 785408   ;;  %s217_s0 = smov [#allocation7]  }
   0xd   :  { %v46_v1 = vld [vmem:[#allocation2] sm:$0xff]  ;;  %v47_v3 = vperm.slane %v44_v0, 0  ;;  %v53_v4 = vperm.slane %v44_v0, 1  ;;  %v60_v5 = vld [vmem:[#allocation2 + $0x10] sm:$0xff]  ;;  %v61_v6 = vperm.slane %v44_v0, 2  ;;  %v68_v7 = vld [vmem:[#allocation2 + $0x18] sm:$0xff] }
   0xe   :  { %v69_v8 = vperm.slane %v44_v0, 3  ;;  %v77_v9 = vperm.slane %v44_v0, 4  ;;  %v76_v13 = vld [vmem:[#allocation2 + $0x20] sm:$0xff]  ;;  %v45_v14 = vld [vmem:[#allocation5 + $0x8] sm:$0xff]  ;;  %v85_v16 = vperm.slane %v44_v0, 5  ;;  %v93_v23 = vperm.slane %v44_v0, 6 }
   0xf   :  { %v49_v10 = vmul.f32 %v47_v3, %v46_v1  ;;  %v55_v11 = vmul.f32 %v53_v4, %v52_v2  ;;  %v63_v12 = vmul.f32 %v61_v6, %v60_v5  ;;  %v84_v18 = vld [vmem:[#allocation2 + $0x28] sm:$0xff]  ;;  %v48_v19 = vperm.slane %v45_v14, 0  ;;  %v92_v27 = vld [vmem:[#allocation2 + $0x30] sm:$0xff]  ;;  %v100_v34 = vld [vmem:[#allocation2 + $0x38] sm:$0xff]  ;;  %s114_s1 = sshll.u32 %s217_s0, 4  ;;  %s116_s23 = sshll.u32 %s253_s2, 4  ;;  %s115_s1 = int_to_ptr.vmem [resolvable:$true] %s114_s1  ;;  %s117_s23 = int_to_ptr.hbm [resolvable:$true] %s116_s23 }
  0x10   :  { %v71_v15 = vmul.f32 %v69_v8, %v68_v7  ;;  %v54_v20 = vperm.slane %v45_v14, 1  ;;  %v62_v21 = vperm.slane %v45_v14, 2  ;;  %v79_v22 = vmul.f32 %v77_v9, %v76_v13 }
  0x11   :  { %v57_v17 = vadd.f32 %v55_v11, %v49_v10  ;;  %v70_v24 = vperm.slane %v45_v14, 3  ;;  %v78_v25 = vperm.slane %v45_v14, 4  ;;  %v50_v28 = vmul.f32 %v48_v19, %v46_v1 }
  0x12   :  { %v56_v29 = vmul.f32 %v54_v20, %v52_v2  ;;  %v64_v30 = vmul.f32 %v62_v21, %v60_v5  ;;  %v87_v31 = vmul.f32 %v85_v16, %v84_v18  ;;  %v101_v32 = vperm.slane %v44_v0, 7 }
  0x13   :  { %v65_v26 = vadd.f32 %v63_v12, %v57_v17  ;;  %v72_v36 = vmul.f32 %v70_v24, %v68_v7  ;;  %v86_v37 = vperm.slane %v45_v14, 5  ;;  %v95_v38 = vmul.f32 %v93_v23, %v92_v27 }
  0x14   :  { %v58_v35 = vadd.f32 %v56_v29, %v50_v28  ;;  %v80_v41 = vmul.f32 %v78_v25, %v76_v13  ;;  %v94_v42 = vperm.slane %v45_v14, 6  ;;  %v103_v43 = vmul.f32 %v101_v32, %v100_v34 }
  0x15   :  { %v73_v33 = vadd.f32 %v71_v15, %v65_v26  ;;  %v88_v46 = vmul.f32 %v86_v37, %v84_v18  ;;  %v102_v47 = vperm.slane %v45_v14, 7 }
  0x16   :  { %v66_v40 = vadd.f32 %v64_v30, %v58_v35  ;;  %v96_v50 = vmul.f32 %v94_v42, %v92_v27 }
  0x17   :  { %v81_v39 = vadd.f32 %v79_v22, %v73_v33  ;;  %v104_v53 = vmul.f32 %v102_v47, %v100_v34 }
  0x18   :  { %v74_v45 = vadd.f32 %v72_v36, %v66_v40 }
  0x19   :  { %v89_v44 = vadd.f32 %v87_v31, %v81_v39 }
  0x1a   :  { %v82_v49 = vadd.f32 %v80_v41, %v74_v45 }
  0x1b   :  { %v97_v48 = vadd.f32 %v95_v38, %v89_v44 }
  0x1c   :  { %v90_v52 = vadd.f32 %v88_v46, %v82_v49 }
  0x1d   :  { %v105_v51 = vadd.f32 %v103_v43, %v97_v48 }
  0x1e   :  { %v98_v54 = vadd.f32 %v96_v50, %v90_v52 }
  0x1f   :  { %108 = vst.msk [vmem:[#allocation7] sm:$0xff] %vm107_vm0, %v105_v51 }
  0x20   :  { %v106_v55 = vadd.f32 %v104_v53, %v98_v54 }
  0x22   :  { %109 = vst.msk [vmem:[#allocation7 + $0x8] sm:$0xff] %vm107_vm0, %v106_v55 }
  0x23   :  { %122 = dma.vmem_to_hbm [thread:$0]  %s115_s1, 256, %s117_s23, [#allocation4], %s214_s17, %s214_s17, %s215_s18  }
  0x24   :  { %211 = dma.done.wait [#allocation4], 256  }
  0x25   :  { %212 = vsyncadd [#allocation4], 4294967040 }
  0x26   :  { %127 = vsyncpa [#allocation3], 1 }
  0x27   :  { %128 = vsyncpa [#allocation6], 1 }
  0x28   :  { %129 = vsyncpa [#allocation4], 1 }

</bundles_post_ra>
